<compile_context>
chip_gen: v7x
topology: tpu7x:2x2x1
jax: 0.10.0
libtpu: 0.0.40
codegen_flags: <defaults>
</compile_context>

<pallas_src>
import jax
import jax.numpy as jnp
from jax.experimental import pallas as pl
from jax.experimental.pallas import tpu as pltpu

IN_FEATURES = 92
H1 = 64
H2 = 32


def mlp_kernel(x_ref, w1_ref, b1_ref, w2_ref, b2_ref, w3_ref, b3_ref, o_ref):
    # x arrives f32 from HBM; downcast in-register so every matmul is a single
    # bf16 MXU pass (f32 accumulation is kept via preferred_element_type).
    x = x_ref[...].astype(jnp.bfloat16)                            # (Bt, 92)
    # fc1 + relu (bias/ReLU in f32)
    h1 = jnp.dot(x, w1_ref[...], preferred_element_type=jnp.float32)
    h1 = jnp.maximum(h1 + b1_ref[...], 0.0)                        # (Bt, 64) f32
    # fc2 + relu
    h2 = jnp.dot(h1.astype(jnp.bfloat16), w2_ref[...],
                 preferred_element_type=jnp.float32)
    h2 = jnp.maximum(h2 + b2_ref[...], 0.0)                        # (Bt, 32) f32
    # fc3: contract the hidden dim of BOTH operands so the result lands as a
    # lane-dense (1, Bt) row (batch on lanes) -- no 1-lane masked column
    # stores.  bf16 h2 halves any relayout/transpose traffic.
    logits = jax.lax.dot_general(
        w3_ref[...], h2.astype(jnp.bfloat16),
        dimension_numbers=(((1,), (1,)), ((), ())),
        preferred_element_type=jnp.float32)                        # (1, Bt)
    logits = logits + b3_ref[...]                                  # (1,1) bcast
    # Exact sigmoid: exp and divide route through the EUP; cheap at (1, Bt).
    o_ref[0] = 1.0 / (1.0 + jnp.exp(-logits))


def _round_up(x, m):
    return ((x + m - 1) // m) * m


def _choose_block(B, block_b):
    if B > block_b:
        return block_b
    # Guarantee >= 2 grid steps for non-trivial batches so the "parallel" grid
    # axis can shard across both TensorCores on v7x.  When the block does not
    # span the full batch its row count must be a multiple of 8.
    if B >= 1024:
        return _round_up(pl.cdiv(B, 2), 8)
    return B


def net_forward(x, params, *, block_b=16384):
    """Mirrors Net.forward: reshape to [B, -1], then the fused, batch-tiled MLP."""
    w1, b1, w2, b2, w3, b3 = params
    B = x.shape[0]
    x2d = x.reshape(B, -1)
    assert x2d.shape[1] == IN_FEATURES, x2d.shape

    bt = _choose_block(B, block_b)
    grid = (pl.cdiv(B, bt),)

    # Weights/biases use constant index_maps: DMA'd once, resident in VMEM
    # across all grid steps.
    resident = lambda a: pl.BlockSpec(a.shape, lambda i: (0,) * a.ndim)

    out3 = pl.pallas_call(
        mlp_kernel,
        out_shape=jax.ShapeDtypeStruct((grid[0], 1, bt), jnp.float32),
        grid=grid,
        in_specs=[
            pl.BlockSpec((bt, IN_FEATURES), lambda i: (i, 0)),
            resident(w1), resident(b1),
            resident(w2), resident(b2),
            resident(w3), resident(b3),
        ],
        out_specs=pl.BlockSpec((1, 1, bt), lambda i: (i, 0, 0)),
        compiler_params=pltpu.CompilerParams(
            dimension_semantics=("parallel",),
            # bt=16384: ~5.8 MB f32 x tile x2 buffers + a few MB of f32/bf16
            # temps -- comfortably inside this limit and inside v7x's 64 MiB
            # physical VMEM.
            vmem_limit_bytes=48 * 1024 * 1024),
    )(x2d, w1, b1, w2, b2, w3, b3)

    # (num_tiles, 1, bt) -> (B, 1); rows past B (ragged last tile) are dropped.
    return out3.reshape(-1)[:B].reshape(B, 1)


def init_params(key):
    """Deterministic params.  w1/w2 stored [in, out] bf16 (kernel computes
    x @ W directly); w3 stored [out, in] = (1, 32) bf16 so fc3 contracts h2's
    hidden dim and yields a lane-dense row.  Biases stay f32."""
    ks = jax.random.split(key, 6)
    s = 0.1
    w1 = (s * jax.random.normal(ks[0], (IN_FEATURES, H1), jnp.float32)).astype(jnp.bfloat16)
    b1 = s * jax.random.normal(ks[1], (1, H1), jnp.float32)
    w2 = (s * jax.random.normal(ks[2], (H1, H2), jnp.float32)).astype(jnp.bfloat16)
    b2 = s * jax.random.normal(ks[3], (1, H2), jnp.float32)
    w3 = (s * jax.random.normal(ks[4], (1, H2), jnp.float32)).astype(jnp.bfloat16)  # [out, in]
    b3 = s * jax.random.normal(ks[5], (1, 1), jnp.float32)
    return (w1, b1, w2, b2, w3, b3)


def reference_forward(x, params):
    """Pure-JAX reference mirroring Net.forward with the same mixed precision
    (bf16 matmul operands, f32 accumulation / bias / ReLU) as the kernel."""
    w1, b1, w2, b2, w3, b3 = params
    xb = x.reshape(x.shape[0], -1)
    h = jnp.dot(xb.astype(jnp.bfloat16), w1, preferred_element_type=jnp.float32)
    h = jnp.maximum(h + b1, 0.0)
    h = jnp.dot(h.astype(jnp.bfloat16), w2, preferred_element_type=jnp.float32)
    h = jnp.maximum(h + b2, 0.0)
    logits = jnp.dot(h.astype(jnp.bfloat16), w3.T,
                     preferred_element_type=jnp.float32) + b3
    return jax.nn.sigmoid(logits)


if __name__ == "__main__":
    key = jax.random.PRNGKey(0)
    k_x, k_p = jax.random.split(key)
    params = init_params(k_p)

    # Small demo batch; forward flattens trailing dims to 92 features (4*23).
    x = jax.random.normal(k_x, (2, 4, 23), jnp.float32)

    out = jax.block_until_ready(net_forward(x, params))
    ref = reference_forward(x, params)

    assert out.shape == (2, 1), out.shape
    assert jnp.allclose(out, ref, atol=2e-3, rtol=2e-3), (out, ref)
    print("KERNEL_OK")
</pallas_src>

<mosaic_0001>
module attributes {stable_mosaic.version = 11 : i64} {
  func.func @mlp_kernel(%arg0: i32, %arg1: memref<2x92xf32, #tpu.memory_space<vmem>>, %arg2: memref<92x64xbf16, #tpu.memory_space<vmem>>, %arg3: memref<1x64xf32, #tpu.memory_space<vmem>>, %arg4: memref<64x32xbf16, #tpu.memory_space<vmem>>, %arg5: memref<1x32xf32, #tpu.memory_space<vmem>>, %arg6: memref<1x32xbf16, #tpu.memory_space<vmem>>, %arg7: memref<1x1xf32, #tpu.memory_space<vmem>>, %arg8: memref<1x1x2xf32, #tpu.memory_space<vmem>>) attributes {dimension_semantics = [#tpu.dimension_semantics<parallel>], iteration_bounds = array<i64: 1>, scalar_prefetch = 0 : i64, scratch_operands = 0 : i64, tpu.core_type = #tpu.core_type<tc>, window_params = [{transform_indices = @transform_0, window_bounds = array<i64: 2, 92>}, {pipeline_mode = #tpu.pipeline_mode<synchronous>, transform_indices = @transform_1, window_bounds = array<i64: 92, 64>}, {pipeline_mode = #tpu.pipeline_mode<synchronous>, transform_indices = @transform_2, window_bounds = array<i64: 1, 64>}, {pipeline_mode = #tpu.pipeline_mode<synchronous>, transform_indices = @transform_3, window_bounds = array<i64: 64, 32>}, {pipeline_mode = #tpu.pipeline_mode<synchronous>, transform_indices = @transform_4, window_bounds = array<i64: 1, 32>}, {pipeline_mode = #tpu.pipeline_mode<synchronous>, transform_indices = @transform_5, window_bounds = array<i64: 1, 32>}, {pipeline_mode = #tpu.pipeline_mode<synchronous>, transform_indices = @transform_6, window_bounds = array<i64: 1, 1>}, {transform_indices = @transform_7, window_bounds = array<i64: 1, 1, 2>}]} {
    %c0 = arith.constant 0 : index
    %c0_0 = arith.constant 0 : index
    %0 = vector.load %arg1[%c0, %c0_0] : memref<2x92xf32, #tpu.memory_space<vmem>>, vector<2x92xf32>
    %1 = arith.truncf %0 : vector<2x92xf32> to vector<2x92xbf16>
    %c0_1 = arith.constant 0 : index
    %c0_2 = arith.constant 0 : index
    %2 = vector.load %arg2[%c0_1, %c0_2] : memref<92x64xbf16, #tpu.memory_space<vmem>>, vector<92x64xbf16>
    %cst = arith.constant dense<0.000000e+00> : vector<2x64xf32>
    %3 = tpu.matmul %1, %2, %cst {dimension_numbers = #tpu.dot_dimension_numbers<[1], [0], [0], [1], [0, 0, 1, 1], [], []>} : vector<2x92xbf16>, vector<92x64xbf16>, vector<2x64xf32> -> vector<2x64xf32>
    %c0_3 = arith.constant 0 : index
    %c0_4 = arith.constant 0 : index
    %4 = vector.load %arg3[%c0_3, %c0_4] : memref<1x64xf32, #tpu.memory_space<vmem>>, vector<1x64xf32>
    %5 = vector.broadcast %4 : vector<1x64xf32> to vector<2x64xf32>
    %6 = arith.addf %3, %5 : vector<2x64xf32>
    %cst_5 = arith.constant 0.000000e+00 : f32
    %7 = vector.broadcast %cst_5 : f32 to vector<2x64xf32>
    %8 = arith.maximumf %6, %7 : vector<2x64xf32>
    %9 = arith.truncf %8 : vector<2x64xf32> to vector<2x64xbf16>
    %c0_6 = arith.constant 0 : index
    %c0_7 = arith.constant 0 : index
    %10 = vector.load %arg4[%c0_6, %c0_7] : memref<64x32xbf16, #tpu.memory_space<vmem>>, vector<64x32xbf16>
    %cst_8 = arith.constant dense<0.000000e+00> : vector<2x32xf32>
    %11 = tpu.matmul %9, %10, %cst_8 {dimension_numbers = #tpu.dot_dimension_numbers<[1], [0], [0], [1], [0, 0, 1, 1], [], []>} : vector<2x64xbf16>, vector<64x32xbf16>, vector<2x32xf32> -> vector<2x32xf32>
    %c0_9 = arith.constant 0 : index
    %c0_10 = arith.constant 0 : index
    %12 = vector.load %arg5[%c0_9, %c0_10] : memref<1x32xf32, #tpu.memory_space<vmem>>, vector<1x32xf32>
    %13 = vector.broadcast %12 : vector<1x32xf32> to vector<2x32xf32>
    %14 = arith.addf %11, %13 : vector<2x32xf32>
    %cst_11 = arith.constant 0.000000e+00 : f32
    %15 = vector.broadcast %cst_11 : f32 to vector<2x32xf32>
    %16 = arith.maximumf %14, %15 : vector<2x32xf32>
    %c0_12 = arith.constant 0 : index
    %c0_13 = arith.constant 0 : index
    %17 = vector.load %arg6[%c0_12, %c0_13] : memref<1x32xbf16, #tpu.memory_space<vmem>>, vector<1x32xbf16>
    %18 = arith.truncf %16 : vector<2x32xf32> to vector<2x32xbf16>
    %cst_14 = arith.constant dense<0.000000e+00> : vector<1x2xf32>
    %19 = tpu.matmul %17, %18, %cst_14 {dimension_numbers = #tpu.dot_dimension_numbers<[1], [1], [0], [0], [0, 0, 1, 0], [], []>} : vector<1x32xbf16>, vector<2x32xbf16>, vector<1x2xf32> -> vector<1x2xf32>
    %c0_15 = arith.constant 0 : index
    %c0_16 = arith.constant 0 : index
    %20 = vector.load %arg7[%c0_15, %c0_16] : memref<1x1xf32, #tpu.memory_space<vmem>>, vector<1x1xf32>
    %21 = vector.broadcast %20 : vector<1x1xf32> to vector<1x2xf32>
    %22 = arith.addf %19, %21 : vector<1x2xf32>
    %cst_17 = arith.constant 0.000000e+00 : f32
    %23 = vector.broadcast %cst_17 : f32 to vector<1x2xf32>
    %24 = arith.subf %23, %22 : vector<1x2xf32>
    %25 = math.exp %24 : vector<1x2xf32>
    %cst_18 = arith.constant 1.000000e+00 : f32
    %26 = vector.broadcast %cst_18 : f32 to vector<1x2xf32>
    %27 = arith.addf %26, %25 : vector<1x2xf32>
    %cst_19 = arith.constant 1.000000e+00 : f32
    %28 = vector.broadcast %cst_19 : f32 to vector<1x2xf32>
    %29 = arith.divf %28, %27 : vector<1x2xf32>
    %c0_20 = arith.constant 0 : index
    %c0_21 = arith.constant 0 : index
    %c0_22 = arith.constant 0 : index
    %30 = vector.load %arg8[%c0_20, %c0_21, %c0_22] : memref<1x1x2xf32, #tpu.memory_space<vmem>>, vector<1x1x2xf32>
    %31 = vector.shape_cast %30 : vector<1x1x2xf32> to vector<1x2xf32>
    %32 = vector.shape_cast %29 : vector<1x2xf32> to vector<1x1x2xf32>
    tpu.vector_store %arg8[%c0_20, %c0_21, %c0_22], %32 {strides = array<i32>} : memref<1x1x2xf32, #tpu.memory_space<vmem>>, vector<1x1x2xf32>,
    return
  }
  func.func @transform_0(%arg0: i32) -> (i32, i32) {
    %c0_i32 = arith.constant 0 : i32
    %c0_i32_0 = arith.constant 0 : i32
    return %arg0, %c0_i32 : i32, i32
  }
  func.func @transform_1(%arg0: i32) -> (i32, i32) {
    %c0_i32 = arith.constant 0 : i32
    %c0_i32_0 = arith.constant 0 : i32
    %c0_i32_1 = arith.constant 0 : i32
    return %c0_i32, %c0_i32_0 : i32, i32
  }
  func.func @transform_2(%arg0: i32) -> (i32, i32) {
    %c0_i32 = arith.constant 0 : i32
    %c0_i32_0 = arith.constant 0 : i32
    %c0_i32_1 = arith.constant 0 : i32
    return %c0_i32, %c0_i32_0 : i32, i32
  }
  func.func @transform_3(%arg0: i32) -> (i32, i32) {
    %c0_i32 = arith.constant 0 : i32
    %c0_i32_0 = arith.constant 0 : i32
    %c0_i32_1 = arith.constant 0 : i32
    return %c0_i32, %c0_i32_0 : i32, i32
  }
  func.func @transform_4(%arg0: i32) -> (i32, i32) {
    %c0_i32 = arith.constant 0 : i32
    %c0_i32_0 = arith.constant 0 : i32
    %c0_i32_1 = arith.constant 0 : i32
    return %c0_i32, %c0_i32_0 : i32, i32
  }
  func.func @transform_5(%arg0: i32) -> (i32, i32) {
    %c0_i32 = arith.constant 0 : i32
    %c0_i32_0 = arith.constant 0 : i32
    %c0_i32_1 = arith.constant 0 : i32
    return %c0_i32, %c0_i32_0 : i32, i32
  }
  func.func @transform_6(%arg0: i32) -> (i32, i32) {
    %c0_i32 = arith.constant 0 : i32
    %c0_i32_0 = arith.constant 0 : i32
    %c0_i32_1 = arith.constant 0 : i32
    return %c0_i32, %c0_i32_0 : i32, i32
  }
  func.func @transform_7(%arg0: i32) -> (i32, i32, i32) {
    %c0_i32 = arith.constant 0 : i32
    %c0_i32_0 = arith.constant 0 : i32
    %c0_i32_1 = arith.constant 0 : i32
    return %arg0, %c0_i32, %c0_i32_0 : i32, i32, i32
  }
}

</mosaic_0001>

<bundles_post_ra>
// kernel: tpu_custom_call.1
= control target key start
LH: loop header
LB: loop body
LE: loop exit
PB: predicated region body
PF: predicated region fallthrough
CT: control target
= control target key end

     0   :  { %s511_s0 = inlined_call_operand.vmem [shape: f32[2,92], index: 0, kind: input, shape index: {}]   ;;  %s512_s1 = inlined_call_operand.vmem [shape: bf16[92,64], index: 1, kind: input, shape index: {}]   ;;  %s513_s2 = inlined_call_operand.vmem [shape: f32[1,64], index: 2, kind: input, shape index: {}]   ;;  %s514_s3 = inlined_call_operand.vmem [shape: bf16[64,32], index: 3, kind: input, shape index: {}]   ;;  %s515_s4 = inlined_call_operand.vmem [shape: f32[1,32], index: 4, kind: input, shape index: {}]   ;;  %s516_s5 = inlined_call_operand.vmem [shape: bf16[1,32], index: 5, kind: input, shape index: {}]   ;;  %s517_s6 = inlined_call_operand.<no memory space> [shape: f32[1,1], index: 6, kind: input, shape index: {}]   ;;  %s518_s7 = inlined_call_operand.hbm [shape: f32[1,1,2], index: 7, kind: output, shape index: {}]  }
   0x1   :  { %v12_v0 = vstv %s517_s6 }
   0x2   :  { %13 = vst [vmem:[#allocation2] sm:$0x1] %v12_v0 }
   0x3   :  { %v369_v1 = vld [vmem:[%s512_s1] sm:$0xff]   ;;  %v407_v2 = vmov 0.0   ;;  %v370_v3 = vld [vmem:[%s512_s1 + $0x8] sm:$0xff]   ;;  %vm408_vm0 = vmmov 0   ;;  %v371_v4 = vld [vmem:[%s512_s1 + $0x10] sm:$0xff]  }
   0x4   :  { %330 = vmatprep.subr.bf16.mxu0 %v407_v2  ;;  %346 = vmatprep.subr.bf16.mxu1 %v407_v2  ;;  %v375_v5 = vld [vmem:[%s514_s3] sm:$0xff]   ;;  %v376_v6 = vld [vmem:[%s514_s3 + $0x8] sm:$0xff]   ;;  %v372_v7 = vld [vmem:[%s512_s1 + $0x18] sm:$0xff]  }
   0x5   :  { %331 = vmatpush3.bf16.msra.mxu0 %v369_v1  ;;  %342 = vmatprep.mubr.msk.bf16.mxu0 %vm408_vm0, %v407_v2 }
   0x6   :  { %332 = vmatprep.subr.bf16.mxu0 %v407_v2  ;;  %354 = vmatprep.mubr.msk.bf16.mxu1 %vm408_vm0, %v407_v2 }
   0x7   :  { %347 = vmatpush3.bf16.msra.mxu1 %v375_v5 }
   0x8   :  { %348 = vmatprep.subr.bf16.mxu1 %v407_v2 }
   0x9   :  { %333 = vmatpush3.bf16.msra.mxu0 %v370_v3 }
   0xa   :  { %334 = vmatprep.subr.bf16.mxu0 %v407_v2 }
   0xd   :  { %335 = vmatpush3.bf16.msra.mxu0 %v371_v4 }
   0xe   :  { %14 = vsyncpa [#allocation4], 0  ;;  %336 = vmatprep.subr.bf16.mxu0 %v407_v2  ;;  %349 = vmatpush3.bf16.msra.mxu1 %v376_v6  ;;  %v373_v8 = vld [vmem:[%s512_s1 + $0x20] sm:$0xff]   ;;  %v374_v9 = vld [vmem:[%s512_s1 + $0x28] sm:$0x3f]   ;;  %vm90_vm1 = vcmask 1045504   ;;  %v228_v35 = vlaneseq }
   0xf   :  { %350 = vmatprep.subr.bf16.mxu1 %v407_v2  ;;  %v30_v10 = vld [vmem:[%s511_s0] sm:$0x3]  ;;  %v92_v11 = vsel %vm90_vm1, %v374_v9, 0  ;;  %vm86_vm2 = vcmask 752640   ;;  %v377_v13 = vld [vmem:[%s514_s3 + $0x10] sm:$0xff]   ;;  %v378_v14 = vld [vmem:[%s514_s3 + $0x18] sm:$0xff]  }
  0x10   :  { %v31_v12 = vpack.c.bf16 %v30_v10, %v30_v10  ;;  %v301_v15 = vld [vmem:[%s513_s2] ss:$0 sm:$0xff]  ;;  %vm175_vm3 = vcmask 523264   ;;  %v409_v24 = vmov 0   ;;  %vm232_vm4 = vcmask 261120  }
  0x11   :  { %337 = vmatpush3.bf16.msra.mxu0 %v372_v7  ;;  %v222_v23 = vld [vmem:[#allocation2] sm:$0x1]  ;;  %368 = vset.pattern.permute.xlu0 %v409_v24  ;;  %v229_v36 = vshrl.u32 %v228_v35, 7  ;;  %vm285_vm5 = vcmask 8192  }
  0x12   :  { %338 = vmatprep.subr.bf16.mxu0 %v407_v2  ;;  %351 = vmatpush3.bf16.msra.mxu1 %v377_v13  ;;  %v309_v25 = vld [vmem:[%s515_s4] ss:$0 sm:$0xff]  ;;  %s410_s4 = smov [#allocation3]  }
  0x13   :  { %352 = vmatprep.subr.bf16.mxu1 %v407_v2  ;;  %225 = vperm.xlu0 %368, %v222_v23   ;;  %v220_v34 = vld [vmem:[%s516_s5] sm:$0x1]  ;;  %v230_v37 = vsub.s32 0, %v229_v36  ;;  %s293_s26 = sshll.u32 %s410_s4, 4  ;;  %s294_s26 = int_to_ptr.vmem [resolvable:$true] %s293_s26 }
  0x14   :  { %s383_s5 = scalar_lea.vmem %s294_s26, 16  ;;  %s387_s27 = scalar_lea.vmem %s294_s26, 32 }
  0x15   :  { %339 = vmatpush3.bf16.msra.mxu0 %v373_v8  ;;  %p384_p0 = scmp.ne.s32.totalorder %s294_s26, %s383_s5  ;;  %p388_p1 = scmp.lt.s32.totalorder %s294_s26, %s294_s26 }
  0x16   :  { %340 = vmatprep.subr.bf16.mxu0 %v407_v2  ;;  %353 = vmatpush3.bf16.msra.mxu1 %v378_v14  ;;  %p389_p2 = scmp.lt.s32.totalorder %s387_s27, %s383_s5 }
  0x17   :  { %358 = vmatprep.subr.bf16.mxu1 %v407_v2 }
  0x18   :  { %p390_p3 = por %p389_p2, %p388_p1 }
  0x19   :  { %341 = vmatpush3.bf16.msra.mxu0 %v92_v11 }
  0x1a   :  { %p391_p4 = pnand %p390_p3, %p384_p0 }
  0x1c   :  { %343 = vmatmul.mubr.msk.bf16.vlgmr.msra.gmra.mrb[0].mxu0 %vm86_vm2, %v31_v12 }
  0x92   :  { %v226_v38 = vpop.permute.xlu0 %225 }
  0x93   :  { %v231_v39 = vrot.slane %v226_v38, %v230_v37 }
  0xef   :  { %v128_v16 = vpop.f32.mrb[0].mxu0 }
  0xf0   :  { %v129_v17 = vadd.f32 %v301_v15, %v128_v16  ;;  %v344_v18 = vpop.f32.mrb[1].mxu0 }
  0xf1   :  { %v131_v19 = vpop.f32.mrb[2].mxu0 }
  0xf2   :  { %v134_v20 = vmax.f32 %v129_v17, 0.0  ;;  %v345_v21 = vpop.f32.mrb[3].mxu0 }
  0xf4   :  { %v135_v22 = vpack.c.bf16 %v134_v20, %v134_v20 }
  0xf6   :  { %355 = vmatmul.mubr.msk.bf16.vlgmr.msra.gmra.mrb[0].mxu1 %vm175_vm3, %v135_v22 }
  0xf7   :  { %360 = vmatprep.mubr.msk.bf16.mxu1 %vm408_vm0, %v407_v2 }
 0x1c9   :  { %v213_v26 = vpop.f32.mrb[0].mxu1 }
 0x1ca   :  { %v214_v27 = vadd.f32 %v309_v25, %v213_v26  ;;  %v356_v28 = vpop.f32.mrb[1].mxu1 }
 0x1cb   :  { %v216_v29 = vpop.f32.mrb[2].mxu1 }
 0x1cc   :  { %v219_v30 = vmax.f32 %v214_v27, 0.0  ;;  %v357_v31 = vpop.f32.mrb[3].mxu1 }
 0x1ce   :  { %v221_v32 = vpack.c.bf16 %v219_v30, %v219_v30 }
 0x1d0   :  { %v237_v33 = vsel %vm232_vm4, %v221_v32, 0 }
 0x1d1   :  { %359 = vmatpush3.bf16.xpose.msra.mxu1 %v237_v33 }
 0x1d8   :  { %361 = vmatmul.mubr.msk.bf16.vlgmr.msra.gmra.mrb[4].mxu1 %vm232_vm4, %v220_v34 }
 0x2ab   :  { %v273_v40 = vpop.f32.mrb[4].mxu1 }
 0x2ac   :  { %v274_v41 = vadd.f32 %v273_v40, %v231_v39  ;;  %v362_v42 = vpop.f32.mrb[5].mxu1 }
 0x2ad   :  { %v276_v43 = vpop.f32.mrb[6].mxu1 }
 0x2ae   :  { %v279_v44 = vsub.f32 0.0, %v274_v41  ;;  %v363_v45 = vpop.f32.mrb[7].mxu1 }
 0x2b0   :  { %v280_v46 = vmul.f32 1.442695, %v279_v44 }
 0x2b2   :  { %379 = vpow2.f32 %v280_v46 }
 0x2bc   :  { %v380_v47 = vpop.eup %379 }
 0x2bd   :  { %v282_v48 = vadd.f32 1.0, %v380_v47 }
 0x2bf   :  { %381 = vrcp.f32 %v282_v48 }
 0x2c9   :  { %v382_v49 = vpop.eup %381 }
 0x2ca   :  { %286 = vst.msk [vmem:[#allocation3] sm:$0x1] %vm285_vm5, %v382_v49 }
 0x2cb   :  { %394 = shalt.err (!%p391_p4)
}
 0x2cc   :  { %s395_s6 = scalar_lea.hbm %s518_s7, 16 }
 0x2cd   :  { %p396_p5 = scmp.ne.s32.totalorder %s518_s7, %s395_s6  ;;  %p399_p6 = scmp.lt.u32.totalorder %s395_s6, %s518_s7 }
 0x2cf   :  { %p401_p7 = pnand %p399_p6, %p396_p5 }
 0x2d1   :  { %404 = shalt.err (!%p401_p7)
}
 0x2d2   :  { %296 = dma.vmem_to_hbm [thread:$0]  %s294_s26, 16, %s518_s7, [#allocation4]  }
 0x2d3   :  { %405 = dma.done.wait [#allocation4], 16  }
 0x2d4   :  { %406 = vsyncadd [#allocation4], 4294967280 }
 0x2d5   :  { %300 = vsyncpa [#allocation4], 1 }

</bundles_post_ra>
